<compile_context>
chip_gen: v7x
topology: tpu7x:2x2x1
jax: 0.10.0
libtpu: 0.0.40
codegen_flags: <defaults>
</compile_context>

<pallas_src>
import jax
import jax.numpy as jnp
from jax.experimental import pallas as pl
from jax.experimental.pallas import tpu as pltpu

_LANE = 128


def _softmax_dim0_kernel(x_ref, o_ref):
    # Upcast to f32 for exp/sum; write back in the I/O dtype.
    x_exp = jnp.exp(x_ref[...].astype(jnp.float32))
    total = jnp.sum(x_exp, axis=0, keepdims=True)      # (1, TILE_D)
    inv = pl.reciprocal(total, approx=False)           # one reciprocal per column
    o_ref[...] = (x_exp * inv).astype(o_ref.dtype)


def _choose_tile_d(n, d, itemsize):
    """Pick a lane-dense tile width (multiple of 128) that fits VMEM comfortably."""
    d_pad = pl.cdiv(d, _LANE) * _LANE
    # Rough per-step VMEM footprint: double-buffered in+out blocks in the I/O
    # dtype plus the f32 exp intermediate: ~(4*itemsize + 8) * n * tile bytes.
    budget = 6 << 20  # stay well under the v5e 16 MiB scoped-VMEM default
    for cand in (512, 256, 128):
        tile = min(cand, d_pad)
        if (4 * itemsize + 8) * n * tile <= budget or tile == _LANE:
            return tile
    return _LANE


def softmax_dim0(x):
    """Equivalent of the PyTorch Softmax module's forward (softmax along dim 0)."""
    orig_shape = x.shape
    n = orig_shape[0]
    d = 1
    for s in orig_shape[1:]:
        d *= s
    x2 = x.reshape(n, d)

    tile_d = _choose_tile_d(n, d, jnp.dtype(x.dtype).itemsize)
    d_padded = pl.cdiv(d, tile_d) * tile_d
    if d_padded != d:
        # Columns are independent under a dim-0 softmax, so zero-padding the
        # feature axis (to get lane-dense >=128-wide stores) is safe.
        x2 = jnp.pad(x2, ((0, 0), (0, d_padded - d)))

    out = pl.pallas_call(
        _softmax_dim0_kernel,
        out_shape=jax.ShapeDtypeStruct((n, d_padded), x.dtype),
        grid=(d_padded // tile_d,),
        in_specs=[pl.BlockSpec((n, tile_d), lambda j: (0, j))],
        out_specs=pl.BlockSpec((n, tile_d), lambda j: (0, j)),
        compiler_params=pltpu.CompilerParams(
            dimension_semantics=("parallel",)),
    )(x2)

    if d_padded != d:
        out = out[:, :d]
    return out.reshape(orig_shape)


if __name__ == "__main__":
    key = jax.random.PRNGKey(0)
    # seq=8, hidden=32 — small shape consistent with the module's forward.
    x = jax.random.normal(key, (8, 32), dtype=jnp.float32)

    out = softmax_dim0(x)
    out = jax.block_until_ready(out)

    # Sanity-check against the same naive formulation as the PyTorch module.
    ref = jnp.exp(x) / jnp.sum(jnp.exp(x), axis=0, keepdims=True)
    assert out.shape == x.shape and out.dtype == x.dtype
    assert jnp.allclose(out, ref, atol=1e-6, rtol=1e-6)

    print("KERNEL_OK")
</pallas_src>

<mosaic_0001>
module attributes {stable_mosaic.version = 11 : i64} {
  func.func @_softmax_dim0_kernel(%arg0: i32, %arg1: memref<8x128xf32, #tpu.memory_space<vmem>>, %arg2: memref<8x128xf32, #tpu.memory_space<vmem>>) attributes {dimension_semantics = [#tpu.dimension_semantics<parallel>], iteration_bounds = array<i64: 1>, scalar_prefetch = 0 : i64, scratch_operands = 0 : i64, tpu.core_type = #tpu.core_type<tc>, window_params = [{transform_indices = @transform_0, window_bounds = array<i64: 8, 128>}, {transform_indices = @transform_1, window_bounds = array<i64: 8, 128>}]} {
    %c0 = arith.constant 0 : index
    %c0_0 = arith.constant 0 : index
    %0 = vector.load %arg1[%c0, %c0_0] : memref<8x128xf32, #tpu.memory_space<vmem>>, vector<8x128xf32>
    %1 = math.exp %0 : vector<8x128xf32>
    %cst = arith.constant dense<0.000000e+00> : vector<128xf32>
    %2 = vector.multi_reduction <add>, %1, %cst [0] : vector<8x128xf32> to vector<128xf32>
    %3 = vector.shape_cast %2 : vector<128xf32> to vector<1x128xf32>
    %4 = tpu.reciprocal %3 : vector<1x128xf32> -> vector<1x128xf32>
    %5 = vector.broadcast %4 : vector<1x128xf32> to vector<8x128xf32>
    %6 = arith.mulf %1, %5 : vector<8x128xf32>
    %c0_1 = arith.constant 0 : index
    %c0_2 = arith.constant 0 : index
    %7 = vector.load %arg2[%c0_1, %c0_2] : memref<8x128xf32, #tpu.memory_space<vmem>>, vector<8x128xf32>
    tpu.vector_store %arg2[%c0_1, %c0_2], %6 {strides = array<i32>} : memref<8x128xf32, #tpu.memory_space<vmem>>, vector<8x128xf32>,
    return
  }
  func.func @transform_0(%arg0: i32) -> (i32, i32) {
    %c0_i32 = arith.constant 0 : i32
    %c0_i32_0 = arith.constant 0 : i32
    return %c0_i32, %arg0 : i32, i32
  }
  func.func @transform_1(%arg0: i32) -> (i32, i32) {
    %c0_i32 = arith.constant 0 : i32
    %c0_i32_0 = arith.constant 0 : i32
    return %c0_i32, %arg0 : i32, i32
  }
}

</mosaic_0001>

<bundles_post_ra>
// kernel: tpu_custom_call.1
= control target key start
LH: loop header
LB: loop body
LE: loop exit
PB: predicated region body
PF: predicated region fallthrough
CT: control target
= control target key end

     0   :  { %6 = vsyncpa [#allocation3], 0  ;;  %s138_s0 = inlined_call_operand.hbm [shape: f32[8,128], index: 0, kind: input, shape index: {}]   ;;  %s139_s1 = inlined_call_operand.hbm [shape: f32[8,128], index: 1, kind: output, shape index: {}]  }
   0x1   :  { %7 = vsyncpa [#allocation4], 0  ;;  %s102_s6 = smov [#allocation2]   ;;  %s54_s10 = scalar_lea.hbm %s138_s0, 128 }
   0x2   :  { %s14_s7 = sshll.u32 %s102_s6, 4  ;;  %p55_p0 = scmp.ne.s32.totalorder %s138_s0, %s54_s10  ;;  %s15_s7 = int_to_ptr.vmem [resolvable:$true] %s14_s7 }
   0x3   :  { %p58_p1 = scmp.lt.u32.totalorder %s54_s10, %s138_s0 }
   0x5   :  { %p60_p2 = pnand %p58_p1, %p55_p0 }
   0x7   :  { %63 = shalt.err (!%p60_p2)
}
   0x8   :  { %s64_s15 = scalar_lea.vmem %s15_s7, 128  ;;  %p69_p4 = scmp.lt.s32.totalorder %s15_s7, %s15_s7 }
   0x9   :  { %p65_p3 = scmp.ne.s32.totalorder %s15_s7, %s64_s15  ;;  %p70_p5 = scmp.lt.s32.totalorder %s64_s15, %s64_s15 }
   0xb   :  { %p71_p6 = por %p70_p5, %p69_p4 }
   0xd   :  { %p72_p7 = pnand %p71_p6, %p65_p3 }
   0xf   :  { %75 = shalt.err (!%p72_p7)
}
  0x10   :  { %17 = dma.hbm_to_vmem [thread:$0]  %s138_s0, 128, %s15_s7, [#allocation3]  }
  0x11   :  { %98 = dma.done.wait [#allocation3], 128  }
  0x12   :  { %99 = vsyncadd [#allocation3], 4294967168  ;;  %v21_v0 = vld [vmem:[#allocation2] sm:$0xff]  ;;  %s103_s18 = smov [#allocation5]  }
  0x13   :  { %v22_v1 = vmul.f32 1.442695, %v21_v0  ;;  %s39_s19 = sshll.u32 %s103_s18, 4  ;;  %s40_s19 = int_to_ptr.vmem [resolvable:$true] %s39_s19 }
  0x14   :  { %s76_s0 = scalar_lea.vmem %s40_s19, 128  ;;  %p81_p9 = scmp.lt.s32.totalorder %s40_s19, %s40_s19 }
  0x15   :  { %50 = vpow2.f32 %v22_v1  ;;  %p77_p8 = scmp.ne.s32.totalorder %s40_s19, %s76_s0  ;;  %p82_p10 = scmp.lt.s32.totalorder %s76_s0, %s76_s0 }
  0x17   :  { %p83_p11 = por %p82_p10, %p81_p9 }
  0x19   :  { %p84_p12 = pnand %p83_p11, %p77_p8 }
  0x1f   :  { %v51_v2 = vpop.eup %50 }
  0x20   :  { %v24_v3 = vrot.slane %v51_v2, 4 }
  0x22   :  { %v25_v4 = vadd.f32 %v51_v2, %v24_v3 }
  0x24   :  { %v26_v5 = vrot.slane %v25_v4, 2 }
  0x26   :  { %v27_v6 = vadd.f32 %v26_v5, %v25_v4 }
  0x28   :  { %v28_v7 = vrot.slane %v27_v6, 1 }
  0x2a   :  { %v29_v8 = vadd.f32 %v28_v7, %v27_v6 }
  0x2c   :  { %52 = vrcp.f32 %v29_v8 }
  0x36   :  { %v53_v9 = vpop.eup %52 }
  0x37   :  { %v31_v10 = vmul.f32 %v53_v9, %v51_v2 }
  0x39   :  { %32 = vst [vmem:[#allocation5] sm:$0xff] %v31_v10 }
  0x3a   :  { %87 = shalt.err (!%p84_p12)
}
  0x3b   :  { %s88_s22 = scalar_lea.hbm %s139_s1, 128 }
  0x3c   :  { %p89_p13 = scmp.ne.s32.totalorder %s139_s1, %s88_s22  ;;  %p92_p0 = scmp.lt.u32.totalorder %s88_s22, %s139_s1 }
  0x3e   :  { %p94_p1 = pnand %p92_p0, %p89_p13 }
  0x40   :  { %97 = shalt.err (!%p94_p1)
}
  0x41   :  { %42 = dma.vmem_to_hbm [thread:$0]  %s40_s19, 128, %s139_s1, [#allocation4]  }
  0x42   :  { %100 = dma.done.wait [#allocation4], 128  }
  0x43   :  { %101 = vsyncadd [#allocation4], 4294967168 }
  0x44   :  { %46 = vsyncpa [#allocation3], 1 }
  0x45   :  { %47 = vsyncpa [#allocation4], 1 }

</bundles_post_ra>
